<compile_context>
chip_gen: v6e
topology: v6e:2x2x1
jax: 0.10.0
libtpu: 0.0.40
codegen_flags: <defaults>
</compile_context>

<pallas_src>
import functools

import jax
import jax.numpy as jnp
from jax.experimental import pallas as pl
from jax.experimental.pallas import tpu as pltpu


def _round_up(x, m):
    return ((x + m - 1) // m) * m


# ---------------------------------------------------------------------------
# Pass 1:  HW2 = relu(A_tile @ X @ W1 + b1) @ W2            (row-tiled over A)
# ---------------------------------------------------------------------------
def gcn_layer1_kernel(a_ref, x_ref, w1_ref, b1_ref, w2_ref, hw2_ref):
    # A_tile [tm, N] bf16  @  X [N, F_pad] bf16  -> f32 accumulation on MXU
    ax = jnp.dot(a_ref[...], x_ref[...], preferred_element_type=jnp.float32)
    # (A X) W1 + b1, ReLU  (bias/ReLU in f32)
    h = jnp.dot(ax.astype(jnp.bfloat16), w1_ref[...],
                preferred_element_type=jnp.float32)
    h = jnp.maximum(h + b1_ref[...], 0.0)
    # TODO(synk): training-mode dropout (random mask) not implemented; eval
    # semantics (identity) used.
    # Reassociated layer 2: compute H @ W2 here so pass 2 only propagates a
    # [N, C_pad] intermediate through A.
    hw2_ref[...] = jnp.dot(h.astype(jnp.bfloat16), w2_ref[...],
                           preferred_element_type=jnp.float32
                           ).astype(jnp.bfloat16)


# ---------------------------------------------------------------------------
# Pass 2:  logits = A_tile @ HW2 + b2 ; log_softmax over the real classes
# ---------------------------------------------------------------------------
def gcn_layer2_kernel(a_ref, hw2_ref, b2_ref, o_ref, *, num_classes):
    logits = jnp.dot(a_ref[...], hw2_ref[...],
                     preferred_element_type=jnp.float32) + b2_ref[...]
    # Mask padded class lanes out of the softmax.
    col = jax.lax.broadcasted_iota(jnp.int32, logits.shape, 1)
    valid = col < num_classes
    logits = jnp.where(valid, logits, -jnp.inf)
    m = jnp.max(logits, axis=1, keepdims=True)
    shifted = logits - m
    lse = jnp.log(jnp.sum(jnp.exp(shifted), axis=1, keepdims=True))
    o_ref[...] = jnp.where(valid, shifted - lse, 0.0)


def gcn_forward(a_hat, x, w1, b1, w2, b2, *, tm=128):
    """Full 2-layer GCN forward.  a_hat: [N,N], x: [N,F], returns [N,C] f32."""
    n = x.shape[0]
    f_in, hid = w1.shape
    c = w2.shape[1]
    assert n % tm == 0, "tm must divide N for this simple tiling"

    f_pad = _round_up(f_in, 128)
    h_pad = _round_up(hid, 128)
    c_pad = _round_up(c, 128)

    # Host-side zero padding to lane-friendly widths (keeps the math exact) and
    # bf16 casts for MXU operands; biases stay f32.
    a_bf = a_hat.astype(jnp.bfloat16)
    x_p = jnp.pad(x, ((0, 0), (0, f_pad - f_in))).astype(jnp.bfloat16)
    w1_p = jnp.pad(w1, ((0, f_pad - f_in), (0, h_pad - hid))).astype(jnp.bfloat16)
    b1_p = jnp.pad(b1.reshape(1, -1).astype(jnp.float32),
                   ((0, 0), (0, h_pad - hid)))
    w2_p = jnp.pad(w2, ((0, h_pad - hid), (0, c_pad - c))).astype(jnp.bfloat16)
    b2_p = jnp.pad(b2.reshape(1, -1).astype(jnp.float32),
                   ((0, 0), (0, c_pad - c)))

    cparams = pltpu.CompilerParams(
        dimension_semantics=("parallel",),      # shards row tiles across TCs
        vmem_limit_bytes=48 * 1024 * 1024,      # safe under v7x's 64 MiB VMEM
    )
    grid = (n // tm,)

    # ---- pass 1: HW2 = relu(A X W1 + b1) @ W2 -----------------------------
    hw2 = pl.pallas_call(
        gcn_layer1_kernel,
        out_shape=jax.ShapeDtypeStruct((n, c_pad), jnp.bfloat16),
        grid=grid,
        in_specs=[
            pl.BlockSpec((tm, n), lambda i: (i, 0)),        # A row tile
            pl.BlockSpec((n, f_pad), lambda i: (0, 0)),     # X      (resident)
            pl.BlockSpec((f_pad, h_pad), lambda i: (0, 0)), # W1     (resident)
            pl.BlockSpec((1, h_pad), lambda i: (0, 0)),     # b1     (resident)
            pl.BlockSpec((h_pad, c_pad), lambda i: (0, 0)), # W2     (resident)
        ],
        out_specs=pl.BlockSpec((tm, c_pad), lambda i: (i, 0)),
        compiler_params=cparams,
    )(a_bf, x_p, w1_p, b1_p, w2_p)

    # ---- pass 2: log_softmax(A @ HW2 + b2) ---------------------------------
    out_pad = pl.pallas_call(
        functools.partial(gcn_layer2_kernel, num_classes=c),
        out_shape=jax.ShapeDtypeStruct((n, c_pad), jnp.float32),
        grid=grid,
        in_specs=[
            pl.BlockSpec((tm, n), lambda i: (i, 0)),        # A row tile
            pl.BlockSpec((n, c_pad), lambda i: (0, 0)),     # HW2    (resident)
            pl.BlockSpec((1, c_pad), lambda i: (0, 0)),     # b2     (resident)
        ],
        out_specs=pl.BlockSpec((tm, c_pad), lambda i: (i, 0)),
        compiler_params=cparams,
    )(a_bf, hw2, b2_p)

    return out_pad[:, :c]


def build_normalized_adjacency(edge_index, num_nodes):
    """Dense D^{-1/2} (A + I) D^{-1/2} from a [2, E] edge_index (GCN norm).

    Duplicate edges are summed (matches PyG message aggregation) and self-loops
    are added only to nodes that do not already have one (add_remaining_self_loops).
    """
    src, dst = edge_index[0], edge_index[1]
    a = jnp.zeros((num_nodes, num_nodes), jnp.float32).at[src, dst].add(1.0)
    diag = jnp.diagonal(a)
    a = a + jnp.diag(jnp.where(diag == 0, 1.0, 0.0))
    deg = jnp.sum(a, axis=1)
    d_inv_sqrt = jnp.where(deg > 0, 1.0 / jnp.sqrt(deg), 0.0)
    return d_inv_sqrt[:, None] * a * d_inv_sqrt[None, :]


if __name__ == "__main__":
    # Small synthetic graph consistent with the module:
    #   N nodes, num_features=8, hidden=16, num_classes=4
    N, F_IN, HID, C = 256, 8, 16, 4

    key = jax.random.PRNGKey(0)
    k_x, k_e, k_w1, k_w2 = jax.random.split(key, 4)

    # node features
    x = jax.random.normal(k_x, (N, F_IN), dtype=jnp.float32)

    # synthetic edge_index [2, E]: a ring plus a few random edges (symmetric)
    ring_src = jnp.arange(N, dtype=jnp.int32)
    ring_dst = (ring_src + 1) % N
    extra_src = jax.random.randint(k_e, (8,), 0, N, dtype=jnp.int32)
    extra_dst = (extra_src + 3) % N
    src = jnp.concatenate([ring_src, ring_dst, extra_src, extra_dst])
    dst = jnp.concatenate([ring_dst, ring_src, extra_dst, extra_src])
    edge_index = jnp.stack([src, dst])

    a_hat = build_normalized_adjacency(edge_index, N)

    # deterministic Glorot-style parameters (GCNConv: weight [in, out], bias [out])
    w1 = jax.random.normal(k_w1, (F_IN, HID), dtype=jnp.float32) * (
        1.0 / jnp.sqrt(jnp.float32(F_IN)))
    b1 = jnp.zeros((HID,), jnp.float32)
    w2 = jax.random.normal(k_w2, (HID, C), dtype=jnp.float32) * (
        1.0 / jnp.sqrt(jnp.float32(HID)))
    b2 = jnp.zeros((C,), jnp.float32)

    out = gcn_forward(a_hat, x, w1, b1, w2, b2, tm=128)
    out = jax.block_until_ready(out)

    # sanity: log_softmax rows should sum (in prob space) to ~1
    row_prob_sums = jnp.sum(jnp.exp(out), axis=1)
    assert out.shape == (N, C)
    assert bool(jnp.all(jnp.isfinite(out)))
    assert bool(jnp.all(jnp.abs(row_prob_sums - 1.0) < 1e-4))

    print("KERNEL_OK")
</pallas_src>

<mosaic_0001>
module attributes {stable_mosaic.version = 11 : i64} {
  func.func @gcn_layer1_kernel(%arg0: i32, %arg1: memref<128x256xbf16, #tpu.memory_space<vmem>>, %arg2: memref<256x128xbf16, #tpu.memory_space<vmem>>, %arg3: memref<128x128xbf16, #tpu.memory_space<vmem>>, %arg4: memref<1x128xf32, #tpu.memory_space<vmem>>, %arg5: memref<128x128xbf16, #tpu.memory_space<vmem>>, %arg6: memref<128x128xbf16, #tpu.memory_space<vmem>>) attributes {dimension_semantics = [#tpu.dimension_semantics<parallel>], iteration_bounds = array<i64: 2>, scalar_prefetch = 0 : i64, scratch_operands = 0 : i64, tpu.core_type = #tpu.core_type<tc>, window_params = [{transform_indices = @transform_0, window_bounds = array<i64: 128, 256>}, {pipeline_mode = #tpu.pipeline_mode<synchronous>, transform_indices = @transform_1, window_bounds = array<i64: 256, 128>}, {pipeline_mode = #tpu.pipeline_mode<synchronous>, transform_indices = @transform_2, window_bounds = array<i64: 128, 128>}, {pipeline_mode = #tpu.pipeline_mode<synchronous>, transform_indices = @transform_3, window_bounds = array<i64: 1, 128>}, {pipeline_mode = #tpu.pipeline_mode<synchronous>, transform_indices = @transform_4, window_bounds = array<i64: 128, 128>}, {transform_indices = @transform_5, window_bounds = array<i64: 128, 128>}]} {
    %c0 = arith.constant 0 : index
    %c0_0 = arith.constant 0 : index
    %0 = vector.load %arg1[%c0, %c0_0] : memref<128x256xbf16, #tpu.memory_space<vmem>>, vector<128x256xbf16>
    %c0_1 = arith.constant 0 : index
    %c0_2 = arith.constant 0 : index
    %1 = vector.load %arg2[%c0_1, %c0_2] : memref<256x128xbf16, #tpu.memory_space<vmem>>, vector<256x128xbf16>
    %cst = arith.constant dense<0.000000e+00> : vector<128x128xf32>
    %2 = tpu.matmul %0, %1, %cst {dimension_numbers = #tpu.dot_dimension_numbers<[1], [0], [0], [1], [0, 0, 1, 1], [], []>} : vector<128x256xbf16>, vector<256x128xbf16>, vector<128x128xf32> -> vector<128x128xf32>
    %3 = arith.truncf %2 : vector<128x128xf32> to vector<128x128xbf16>
    %c0_3 = arith.constant 0 : index
    %c0_4 = arith.constant 0 : index
    %4 = vector.load %arg3[%c0_3, %c0_4] : memref<128x128xbf16, #tpu.memory_space<vmem>>, vector<128x128xbf16>
    %cst_5 = arith.constant dense<0.000000e+00> : vector<128x128xf32>
    %5 = tpu.matmul %3, %4, %cst_5 {dimension_numbers = #tpu.dot_dimension_numbers<[1], [0], [0], [1], [0, 0, 1, 1], [], []>} : vector<128x128xbf16>, vector<128x128xbf16>, vector<128x128xf32> -> vector<128x128xf32>
    %c0_6 = arith.constant 0 : index
    %c0_7 = arith.constant 0 : index
    %6 = vector.load %arg4[%c0_6, %c0_7] : memref<1x128xf32, #tpu.memory_space<vmem>>, vector<1x128xf32>
    %7 = vector.broadcast %6 : vector<1x128xf32> to vector<128x128xf32>
    %8 = arith.addf %5, %7 : vector<128x128xf32>
    %cst_8 = arith.constant 0.000000e+00 : f32
    %9 = vector.broadcast %cst_8 : f32 to vector<128x128xf32>
    %10 = arith.maximumf %8, %9 : vector<128x128xf32>
    %11 = arith.truncf %10 : vector<128x128xf32> to vector<128x128xbf16>
    %c0_9 = arith.constant 0 : index
    %c0_10 = arith.constant 0 : index
    %12 = vector.load %arg5[%c0_9, %c0_10] : memref<128x128xbf16, #tpu.memory_space<vmem>>, vector<128x128xbf16>
    %cst_11 = arith.constant dense<0.000000e+00> : vector<128x128xf32>
    %13 = tpu.matmul %11, %12, %cst_11 {dimension_numbers = #tpu.dot_dimension_numbers<[1], [0], [0], [1], [0, 0, 1, 1], [], []>} : vector<128x128xbf16>, vector<128x128xbf16>, vector<128x128xf32> -> vector<128x128xf32>
    %14 = arith.truncf %13 : vector<128x128xf32> to vector<128x128xbf16>
    %c0_12 = arith.constant 0 : index
    %c0_13 = arith.constant 0 : index
    %15 = vector.load %arg6[%c0_12, %c0_13] : memref<128x128xbf16, #tpu.memory_space<vmem>>, vector<128x128xbf16>
    tpu.vector_store %arg6[%c0_12, %c0_13], %14 {strides = array<i32>} : memref<128x128xbf16, #tpu.memory_space<vmem>>, vector<128x128xbf16>,
    return
  }
  func.func @transform_0(%arg0: i32) -> (i32, i32) {
    %c0_i32 = arith.constant 0 : i32
    %c0_i32_0 = arith.constant 0 : i32
    return %arg0, %c0_i32 : i32, i32
  }
  func.func @transform_1(%arg0: i32) -> (i32, i32) {
    %c0_i32 = arith.constant 0 : i32
    %c0_i32_0 = arith.constant 0 : i32
    %c0_i32_1 = arith.constant 0 : i32
    return %c0_i32, %c0_i32_0 : i32, i32
  }
  func.func @transform_2(%arg0: i32) -> (i32, i32) {
    %c0_i32 = arith.constant 0 : i32
    %c0_i32_0 = arith.constant 0 : i32
    %c0_i32_1 = arith.constant 0 : i32
    return %c0_i32, %c0_i32_0 : i32, i32
  }
  func.func @transform_3(%arg0: i32) -> (i32, i32) {
    %c0_i32 = arith.constant 0 : i32
    %c0_i32_0 = arith.constant 0 : i32
    %c0_i32_1 = arith.constant 0 : i32
    return %c0_i32, %c0_i32_0 : i32, i32
  }
  func.func @transform_4(%arg0: i32) -> (i32, i32) {
    %c0_i32 = arith.constant 0 : i32
    %c0_i32_0 = arith.constant 0 : i32
    %c0_i32_1 = arith.constant 0 : i32
    return %c0_i32, %c0_i32_0 : i32, i32
  }
  func.func @transform_5(%arg0: i32) -> (i32, i32) {
    %c0_i32 = arith.constant 0 : i32
    %c0_i32_0 = arith.constant 0 : i32
    return %arg0, %c0_i32 : i32, i32
  }
}

</mosaic_0001>

<bundles_post_ra>
// kernel: tpu_custom_call.1
= control target key start
LH: loop header
LB: loop body
LE: loop exit
PB: predicated region body
PF: predicated region fallthrough
CT: control target
= control target key end

     0   :  { %10 = vsyncpa [#allocation3], 0  ;;  %s2074_s0 = inlined_call_operand.hbm [shape: bf16[256,256], index: 0, kind: input, shape index: {}]   ;;  %s2075_s1 = inlined_call_operand.hbm [shape: bf16[256,128], index: 1, kind: input, shape index: {}]   ;;  %s2076_s2 = inlined_call_operand.hbm [shape: bf16[128,128], index: 2, kind: input, shape index: {}]   ;;  %s2077_s3 = inlined_call_operand.vmem [shape: f32[1,128], index: 3, kind: input, shape index: {}]   ;;  %s2078_s4 = inlined_call_operand.hbm [shape: bf16[128,128], index: 4, kind: input, shape index: {}]   ;;  %s2079_s5 = inlined_call_operand.hbm [shape: bf16[256,128], index: 5, kind: output, shape index: {}]  }
   0x1   :  { %12 = vsyncpa [#allocation3 + $0x1], 0 }
   0x2   :  { %13 = vsyncpa [#allocation6], 0 }
   0x3   :  { %14 = vsyncpa [#allocation9], 0 }
   0x4   :  { %15 = vsyncpa [#allocation4], 0 }
   0x5   :  { %17 = vsyncpa [#allocation4 + $0x1], 0  ;;  %s1841_s18 = smov 0   ;;  %s1843_s19 = smov 0  }
   0x6   :  { %s1845_s20 = smov 0   ;;  %s1847_s21 = smov 0  }
   0x7 LB: > { %s1862_s22 = sadd.s32 4294967295, %s1798_s21   ;;  %s1169_s23 = sadd.s32 4294967294, %s1798_s21   ;;  %s1798_s21 = sphi %s1847_s21, %s2103_s21   ;;  %s1794_s20 = sphi %s1845_s20, %s2102_s20   ;;  %s1790_s19 = sphi %s1843_s19, %s2101_s19   ;;  %s1786_s18 = sphi %s1841_s18, %s2100_s18  }
   0x8   : > { %p43_p0 = scmp.ne.s32.totalorder %s1790_s19, %s1786_s18  ;;  %p2080_p1 = scmp.eq.s32.totalorder %s1862_s22, 0 }
   0x9   : > { %p157_p3 = scmp.eq.s32.totalorder %s1169_s23, 1  ;;  %p1170_p5 = scmp.ge.s32.totalorder %s1798_s21, 1 }
   0xa   : > { %p1871_p4 = por %p2080_p1, %p43_p0  ;;  %p164_p7 = scmp.lt.s32.totalorder %s1798_s21, 3 }
   0xb   : > { %p1876_p6 = por %p157_p3, %p43_p0  ;;  %s1800_s27 = smov [#allocation5]  }
   0xc   : > { %s2084_s24 = scalar_select %p1871_p4, 1, 0 }
   0xd   : > { %s2085_s25 = scalar_select %p1876_p6, 1, 0 }
   0xe   : > { %p1881_p8 = pnand %p1170_p5, %p164_p7  ;;  %s176_s28 = sshll.u32 %s1800_s27, 4  ;;  %s177_s28 = int_to_ptr.vmem [resolvable:$true] %s176_s28 }
   0xf   : > { %s1801_s30 = smov [#allocation7]   ;;  %s1802_s7 = smov [#allocation8]  }
  0x10   : > { %s2086_s26 = scalar_select %p1881_p8, 1, 0 }
  0x11   : > { %p1497_p9 = pneg %p1881_p8  ;;  %s189_s6 = sshll.u32 %s1801_s30, 4  ;;  %s190_s6 = int_to_ptr.vmem [resolvable:$true] %s189_s6 }
  0x12   : > { %s205_s8 = sshll.u32 %s1802_s7, 4  ;;  %s1631_s9 = scalar_lea.vmem %s177_s28, 2048  ;;  %s206_s8 = int_to_ptr.vmem [resolvable:$true] %s205_s8 }
  0x13   : > { %p1890_p11 = pnand %p1497_p9, %p2080_p1  ;;  %p1632_p13 = scmp.ne.s32.totalorder %s177_s28, %s1631_s9 }
  0x14   : > { %p1639_p5 = scmp.lt.s32.totalorder %s177_s28, %s177_s28  ;;  %p1640_p7 = scmp.lt.s32.totalorder %s1631_s9, %s1631_s9 }
  0x15   : > { %p1622_p12 = pneg %p1890_p11 }
  0x16   : > { %p1641_p9 = por %p1640_p7, %p1639_p5 }
  0x17   : > { %p1634_p0 = pnand %p1632_p13, %p1622_p12 }
  0x19   : > { %p1635_p3 = pneg %p1634_p0 }
  0x1b   : > { %p1642_p10 = pnand %p1641_p9, %p1635_p3 }
  0x1d   : > { %1645 = shalt.err (!%p1642_p10)
}
  0x1e   : > { %s1803_s10 = smov 64   ;;  %s1804_s11 = smov 4  }
  0x1f   : > { %1500 = dma.hbm_to_vmem [thread:$0]  (!%p1890_p11), %s2075_s1, 2048, %s177_s28, [#allocation6], %s1803_s10, %s1803_s10, %s1804_s11  }
  0x20   : > { %s1657_s14 = scalar_lea.vmem %s190_s6, 1024  ;;  %p1665_p2 = scmp.lt.s32.totalorder %s190_s6, %s190_s6 }
  0x21   : > { %p1658_p1 = scmp.ne.s32.totalorder %s190_s6, %s1657_s14  ;;  %p1666_p6 = scmp.lt.s32.totalorder %s1657_s14, %s1657_s14 }
  0x23   : > { %p1660_p13 = pnand %p1658_p1, %p1622_p12  ;;  %p1667_p5 = por %p1666_p6, %p1665_p2 }
  0x25   : > { %p1661_p0 = pneg %p1660_p13 }
  0x27   : > { %p1668_p3 = pnand %p1667_p5, %p1661_p0 }
  0x29   : > { %1671 = shalt.err (!%p1668_p3)
}
  0x2a   : > { %1503 = dma.hbm_to_vmem [thread:$0]  (!%p1890_p11), %s2076_s2, 1024, %s190_s6, [#allocation6], %s1803_s10, %s1803_s10, %s1804_s11  }
  0x2b   : > { %s1683_s17 = scalar_lea.vmem %s206_s8, 1024  ;;  %p1691_p9 = scmp.lt.s32.totalorder %s206_s8, %s206_s8 }
  0x2c   : > { %p1684_p10 = scmp.ne.s32.totalorder %s206_s8, %s1683_s17  ;;  %p1692_p13 = scmp.lt.s32.totalorder %s1683_s17, %s1683_s17 }
  0x2e   : > { %p1686_p7 = pnand %p1684_p10, %p1622_p12  ;;  %p1693_p4 = por %p1692_p13, %p1691_p9 }
  0x30   : > { %p1687_p1 = pneg %p1686_p7 }
  0x32   : > { %p1694_p2 = pnand %p1693_p4, %p1687_p1 }
  0x34   : > { %1697 = shalt.err (!%p1694_p2)
}
  0x35   : > { %1506 = dma.hbm_to_vmem [thread:$0]  (!%p1890_p11), %s2078_s4, 1024, %s206_s8, [#allocation9], %s1803_s10, %s1803_s10, %s1804_s11  }
  0x36   : > { %s1921_s28 = sadd.s32 1, %s1798_s21   ;;  %s30_s29 = sadd.s32 1, %s1794_s20 }
  0x37   : > { %s27_s30 = ssub.s32 %s1798_s21, %s1921_s28  ;;  %p37_p6 = scmp.ne.s32.totalorder %s1794_s20, %s1790_s19 }
  0x38   : > { %p28_p4 = scmp.eq.s32.totalorder %s27_s30, 0  ;;  %p38_p12 = scmp.eq.s32.totalorder %s1798_s21, 0 }
  0x39   : > { %p1518_p0 = scmp.lt.s32.totalorder %s1798_s21, 2  ;;  %p2088_p3 = scmp.eq.s32.totalorder %s1862_s22, 1 }
  0x3a   : > { %s1931_s6 = scalar_select %p28_p4, %s1794_s20, %s30_s29  }
  0x3b   : > { %p39_p5 = por %p38_p12, %p37_p6  ;;  %p1935_p10 = por %p2088_p3, %p37_p6 }
  0x3c   : > { %s219_s9 = sand.u32 1, %s1794_s20   ;;  %s1256_s12 = sshll.u32 %s1798_s21, 11 }
  0x3d   : > { %s2089_s7 = scalar_select %p1935_p10, 1, 0 }
  0x3e   : > { %s1175_s8 = sshll.u32 %s219_s9, 7  ;;  %s1944_s13 = scalar_lea.hbm %s2074_s0, %s1256_s12 }
  0x3f   : > { %s223_s14 = scalar_lea.vmem [#allocation2], %s1175_s8  ;;  %p1946_p11 = pnand %p1518_p0, %p39_p5 }
  0x40   : > { %s231_s15 = sshll.u32 %s223_s14, 4  ;;  %s1952_s17 = scalar_lea.sflag [#allocation3], %s219_s9  ;;  %s1950_s15 = int_to_ptr.vmem [resolvable:$true] %s231_s15 }
  0x41   : > { %s1698_s23 = scalar_lea.hbm %s1944_s13, 2048  ;;  %p1700_p1 = pneg %p1946_p11 }
  0x42   : > { %p1699_p7 = scmp.ne.s32.totalorder %s1944_s13, %s1698_s23  ;;  %s1703_s29 = scalar_lea.hbm %s2074_s0, 4096 }
  0x43   : > { %p1704_p2 = scmp.lt.s32.totalorder %s1944_s13, %s2074_s0  ;;  %p1705_p4 = scmp.lt.s32.totalorder %s1703_s29, %s1698_s23 }
  0x44   : > { %p1701_p9 = pnand %p1700_p1, %p1699_p7 }
  0x45   : > { %p1706_p6 = por %p1705_p4, %p1704_p2 }
  0x46   : > { %p1702_p13 = pneg %p1701_p9 }
  0x48   : > { %p1707_p12 = pnand %p1706_p6, %p1702_p13 }
  0x4a   : > { %1710 = shalt.err (!%p1707_p12)
}
  0x4b   : > { %s1711_s9 = scalar_lea.vmem %s1950_s15, 2048  ;;  %s1805_s10 = smov [#allocation2]  }
  0x4c   : > { %p1712_p0 = scmp.ne.s32.totalorder %s1950_s15, %s1711_s9  ;;  %s1716_s11 = sshll.u32 %s1805_s10, 4  ;;  %s1717_s11 = int_to_ptr.vmem [resolvable:$false] %s1716_s11 }
  0x4d   : > { %s1718_s14 = scalar_lea.vmem %s1717_s11, 4096  ;;  %p1719_p7 = scmp.lt.s32.totalorder %s1950_s15, %s1717_s11 }
  0x4e   : > { %p1714_p5 = pnand %p1712_p0, %p1700_p1  ;;  %p1720_p9 = scmp.lt.s32.totalorder %s1718_s14, %s1711_s9 }
  0x50   : > { %p1715_p3 = pneg %p1714_p5  ;;  %p1721_p10 = por %p1720_p9, %p1719_p7 }
  0x52   : > { %p1722_p8 = pnand %p1721_p10, %p1715_p3 }
  0x54   : > { %1725 = shalt.err (!%p1722_p8)
}
  0x55   : > { %s1806_s23 = smov 128   ;;  %s1807_s27 = smov 8  }
  0x56   : > { %1510 = dma.hbm_to_vmem [thread:$0]  (!%p1946_p11), %s1944_s13, 2048, %s1950_s15, %s1952_s17, %s1806_s23, %s1806_s23, %s1807_s27  }
  0x57   : > { %p2091_p1 = scmp.ne.s32.totalorder %s2086_s26, 0 }
  0x58   : > { %s1976_s30 = sand.u32 (!%p2091_p1), 1, %s1790_s19   ;;  %p2092_p8 = scmp.ne.s32.totalorder (!%p2091_p1), %s2084_s24, 0 }
  0x59   : > { %243 = sbr.rel (%p2091_p1) target bundleno = 814 (0x32e), region = 40  ;;  %s1180_s29 = sshll.u32 (!%p2091_p1), %s1976_s30, 7 }
  0x5a   : > { %s246_s12 = scalar_lea.sflag (!%p2091_p1), [#allocation3], %s1976_s30  ;;  %s1980_s8 = scalar_lea.vmem (!%p2091_p1), [#allocation2], %s1180_s29 }
  0x5e   : > { %1769 = dma.done.wait (%p2092_p8), %s246_s12, 2048  }
  0x5f   : > { %1771 = vsyncadd (%p2092_p8), %s246_s12, 4294965248  ;;  %p2093_p10 = scmp.eq.s32.totalorder %s1862_s22, 0 }
  0x61   : > { %1773 = dma.done.wait (%p2093_p10), [#allocation6], 3072   ;;  %p2094_p11 = pmov %p2093_p10 }
  0x62   : > { %p2095_p13 = pmov %p2093_p10 }
  0x63   : > { %1775 = vsyncadd (%p2094_p11), [#allocation6], 4294964224 }
  0x64   : > { %1777 = dma.done.wait (%p2095_p13), [#allocation9], 1024   ;;  %p2096_p2 = pmov %p2093_p10 }
  0x65   : > { %v1564_v0 = vld [vmem:[#allocation5 + $0x78] sm:$0xff]   ;;  %v1566_v2 = vld [vmem:[#allocation5 + $0x70] sm:$0xff]   ;;  %v1568_v4 = vld [vmem:[#allocation5 + $0x68] sm:$0xff]   ;;  %s1184_s13 = sshll.u32 %s1976_s30, 6  ;;  %s1273_s17 = sshll.u32 %s1862_s22, 10 }
  0x66   : > { %1779 = vsyncadd (%p2096_p2), [#allocation9], 4294966272  ;;  %v1565_v1 = vld [vmem:[#allocation5 + $0x38] sm:$0xff]   ;;  %1321 = vmatprep.subr.bf16.mxu0 %v1564_v0  ;;  %v1567_v3 = vld [vmem:[#allocation5 + $0x30] sm:$0xff]   ;;  %s2014_s15 = scalar_lea.vmem [#allocation10], %s1184_s13  ;;  %s2029_s11 = scalar_lea.hbm %s2079_s5, %s1273_s17 }
  0x67   : > { %1322 = vmatpush3.bf16.msra.mxu0 %v1565_v1  ;;  %v1569_v5 = vld [vmem:[#allocation5 + $0x28] sm:$0xff]   ;;  %v1570_v6 = vld [vmem:[#allocation5 + $0x60] sm:$0xff]   ;;  %v1572_v8 = vld [vmem:[#allocation5 + $0x58] sm:$0xff]   ;;  %s1067_s16 = sshll.u32 %s2014_s15, 4  ;;  %s1054_s14 = scalar_lea.sflag [#allocation4], %s1976_s30  ;;  %s2024_s16 = int_to_ptr.vmem [resolvable:$true] %s1067_s16 }
  0x68   : > { %1323 = vmatprep.subr.bf16.mxu0 %v1566_v2  ;;  %v1571_v7 = vld [vmem:[#allocation5 + $0x20] sm:$0xff]   ;;  %v1573_v9 = vld [vmem:[#allocation5 + $0x18] sm:$0xff]   ;;  %v1574_v10 = vld [vmem:[#allocation5 + $0x50] sm:$0xff]   ;;  %s1726_s23 = scalar_lea.vmem %s2024_s16, 1024  ;;  %p2097_p6 = scmp.ne.s32.totalorder %s2089_s7, 0 }
  0x69   : > { %v1582_v11 = vld [vmem:[%s1980_s8 + $0x4] ss:$8 sps:$4 sm:$0xff]   ;;  %v1575_v12 = vld [vmem:[#allocation5 + $0x10] sm:$0xff]   ;;  %v1604_v17 = vld [vmem:[#allocation7 + $0x38] sm:$0xff]   ;;  %p1727_p4 = scmp.ne.s32.totalorder %s2024_s16, %s1726_s23  ;;  %s1808_s22 = smov [#allocation10]  }
  0x6a   : > { %547 = vmatprep.mubr.bf16.mxu0 %v1582_v11  ;;  %v1576_v13 = vld [vmem:[#allocation5 + $0x48] sm:$0xff]   ;;  %v1578_v15 = vld [vmem:[#allocation5 + $0x40] sm:$0xff]   ;;  %v1605_v19 = vld [vmem:[#allocation7 + $0x30] sm:$0xff]   ;;  %1417 = vmatprep.subr.bf16.mxu1 %v1604_v17  ;;  %s1730_s27 = sshll.u32 %s1808_s22, 4  ;;  %s1731_s27 = int_to_ptr.vmem [resolvable:$false] %s1730_s27 }
  0x6b   : > { %1324 = vmatpush3.bf16.msra.mxu0 %v1567_v3  ;;  %v1577_v14 = vld [vmem:[#allocation5 + $0x8] sm:$0xff]   ;;  %v1579_v16 = vld [vmem:[#allocation5] sm:$0xff]   ;;  %v1583_v20 = vld [vmem:[%s1980_s8 + $0x14] ss:$8 sps:$4 sm:$0xff]   ;;  %1418 = vmatpush3.bf16.msra.mxu1 %v1604_v17  ;;  %p1728_p12 = pnand %p1727_p4, %p2097_p6  ;;  %s1732_s29 = scalar_lea.vmem %s1731_s27, 2048 }
  0x6c   : > { %1325 = vmatprep.subr.bf16.mxu0 %v1568_v4  ;;  %v1580_v18 = vld [vmem:[%s1980_s8] ss:$8 sps:$4 sm:$0xff]   ;;  %1419 = vmatprep.subr.bf16.mxu1 %v1605_v19  ;;  %v1585_v23 = vld [vmem:[%s1980_s8 + $0x10] ss:$8 sps:$4 sm:$0xff]   ;;  %v1586_v24 = vld [vmem:[%s1980_s8 + $0x24] ss:$8 sps:$4 sm:$0xff]   ;;  %p1733_p5 = scmp.lt.s32.totalorder %s2024_s16, %s1731_s27  ;;  %p1734_p3 = scmp.lt.s32.totalorder %s1732_s29, %s1726_s23 }
  0x6d   : > { %v1606_v21 = vld [vmem:[#allocation7 + $0x28] sm:$0xff]   ;;  %v1607_v22 = vld [vmem:[#allocation7 + $0x20] sm:$0xff]   ;;  %v1589_v26 = vld [vmem:[%s1980_s8 + $0x34] ss:$8 sps:$4 sm:$0xff]   ;;  %p1729_p0 = pneg %p1728_p12 }
  0x6e   : > { %v1588_v25 = vld [vmem:[%s1980_s8 + $0x20] ss:$8 sps:$4 sm:$0xff]   ;;  %v1591_v27 = vld [vmem:[%s1980_s8 + $0x30] ss:$8 sps:$4 sm:$0xff]   ;;  %v1592_v28 = vld [vmem:[%s1980_s8 + $0x44] ss:$8 sps:$4 sm:$0xff]   ;;  %p1735_p7 = por %p1734_p3, %p1733_p5 }
  0x6f   : > { %1326 = vmatpush3.bf16.msra.mxu0 %v1569_v5  ;;  %1420 = vmatpush3.bf16.msra.mxu1 %v1605_v19  ;;  %v1594_v29 = vld [vmem:[%s1980_s8 + $0x40] ss:$8 sps:$4 sm:$0xff]   ;;  %v1595_v30 = vld [vmem:[%s1980_s8 + $0x54] ss:$8 sps:$4 sm:$0xff]   ;;  %v1597_v31 = vld [vmem:[%s1980_s8 + $0x50] ss:$8 sps:$4 sm:$0xff]  }
  0x70   : > { %1327 = vmatprep.subr.bf16.mxu0 %v1570_v6  ;;  %1421 = vmatprep.subr.bf16.mxu1 %v1606_v21  ;;  %v1598_v32 = vld [vmem:[%s1980_s8 + $0x64] ss:$8 sps:$4 sm:$0xff]   ;;  %v1600_v33 = vld [vmem:[%s1980_s8 + $0x60] ss:$8 sps:$4 sm:$0xff]   ;;  %v1601_v34 = vld [vmem:[%s1980_s8 + $0x74] ss:$8 sps:$4 sm:$0xff]   ;;  %p1736_p9 = pnand %p1735_p7, %p1729_p0 }
  0x71   : > { %v1603_v35 = vld [vmem:[%s1980_s8 + $0x70] ss:$8 sps:$4 sm:$0xff]   ;;  %v1610_v38 = vld [vmem:[#allocation7 + $0x8] sm:$0xff]   ;;  %v1611_v39 = vld [vmem:[#allocation7] sm:$0xff]  }
  0x72   : > { %v1608_v36 = vld [vmem:[#allocation7 + $0x18] sm:$0xff]   ;;  %v1609_v37 = vld [vmem:[#allocation7 + $0x10] sm:$0xff]   ;;  %v1614_v59 = vld [vmem:[#allocation8 + $0x28] sm:$0xff]  }
  0x73   : > { %1328 = vmatpush3.bf16.msra.mxu0 %v1571_v7  ;;  %1422 = vmatpush3.bf16.msra.mxu1 %v1606_v21  ;;  %v1612_v40 = vld [vmem:[#allocation8 + $0x38] sm:$0xff]   ;;  %v1613_v56 = vld [vmem:[#allocation8 + $0x30] sm:$0xff]   ;;  %v1615_v1 = vld [vmem:[#allocation8 + $0x20] sm:$0xff]  }
  0x74   : > { %1329 = vmatprep.subr.bf16.mxu0 %v1572_v8  ;;  %1423 = vmatprep.subr.bf16.mxu1 %v1607_v22  ;;  %v1616_v4 = vld [vmem:[#allocation8 + $0x18] sm:$0xff]  }
  0x77   : > { %1330 = vmatpush3.bf16.msra.mxu0 %v1573_v9  ;;  %1424 = vmatpush3.bf16.msra.mxu1 %v1607_v22 }
  0x78   : > { %1331 = vmatprep.subr.bf16.mxu0 %v1574_v10  ;;  %1425 = vmatprep.subr.bf16.mxu1 %v1608_v36 }
  0x7b   : > { %1332 = vmatpush3.bf16.msra.mxu0 %v1575_v12  ;;  %1426 = vmatpush3.bf16.msra.mxu1 %v1608_v36 }
  0x7c   : > { %1333 = vmatprep.subr.bf16.mxu0 %v1576_v13  ;;  %1427 = vmatprep.subr.bf16.mxu1 %v1609_v37 }
  0x7f   : > { %1334 = vmatpush3.bf16.msra.mxu0 %v1577_v14  ;;  %1428 = vmatpush3.bf16.msra.mxu1 %v1609_v37  ;;  %v1617_v37 = vld [vmem:[#allocation8 + $0x10] sm:$0xff]  }
  0x80   : > { %1335 = vmatprep.subr.bf16.mxu0 %v1578_v15  ;;  %1429 = vmatprep.subr.bf16.mxu1 %v1610_v38 }
  0x83   : > { %1336 = vmatpush3.bf16.msra.mxu0 %v1579_v16  ;;  %1430 = vmatpush3.bf16.msra.mxu1 %v1610_v38  ;;  %v1618_v38 = vld [vmem:[#allocation8 + $0x8] sm:$0xff]  }
  0x84   : > { %1431 = vmatprep.subr.bf16.mxu1 %v1611_v39 }
  0x86   : > { %548 = vmatmul.mubr.bf16.vlgmr.msra.gmra.mxu0 %v1580_v18 }
  0x87   : > { %555 = vmatprep.mubr.bf16.mxu0 %v1583_v20  ;;  %1432 = vmatpush3.bf16.msra.mxu1 %v1611_v39  ;;  %v1619_v39 = vld [vmem:[#allocation8] sm:$0xff]  }
  0x88   : > { %1449 = vmatprep.subr.bf16.mxu1 %v1612_v40 }
  0x8e   : > { %556 = vmatmul.mubr.bf16.gmra.mxu0 %v1585_v23 }
  0x8f   : > { %563 = vmatprep.mubr.bf16.mxu0 %v1586_v24 }
  0x96   : > { %564 = vmatmul.mubr.bf16.gmra.mxu0 %v1588_v25 }
  0x97   : > { %571 = vmatprep.mubr.bf16.mxu0 %v1589_v26 }
  0x9e   : > { %572 = vmatmul.mubr.bf16.gmra.mxu0 %v1591_v27 }
  0x9f   : > { %579 = vmatprep.mubr.bf16.mxu0 %v1592_v28 }
  0xa6   : > { %580 = vmatmul.mubr.bf16.gmra.mxu0 %v1594_v29 }
  0xa7   : > { %587 = vmatprep.mubr.bf16.mxu0 %v1595_v30 }
  0xae   : > { %588 = vmatmul.mubr.bf16.gmra.mxu0 %v1597_v31 }
  0xaf   : > { %595 = vmatprep.mubr.bf16.mxu0 %v1598_v32 }
  0xb6   : > { %596 = vmatmul.mubr.bf16.gmra.mxu0 %v1600_v33 }
  0xb7   : > { %603 = vmatprep.mubr.bf16.mxu0 %v1601_v34 }
  0xbe   : > { %604 = vmatmul.mubr.bf16.gmra.mxu0 %v1603_v35 }
 0x146   : > { %v1337_v41 = vpop.f32.mrf.mxu0 }
 0x148   : > { %v1338_v42 = vpop.f32.mrf.mxu0 }
 0x149   : > { %v1339_v45 = vadd.f32 %v1338_v42, %v1337_v41  ;;  %v1217_v42 = vld [vmem:[%s2077_s3] ss:$0 sm:$0xff] }
 0x14a   : > { %v1340_v43 = vpop.f32.mrf.mxu0 }
 0x14c   : > { %v1341_v44 = vpop.f32.mrf.mxu0 }
 0x14d   : > { %v1342_v46 = vadd.f32 %v1341_v44, %v1340_v43 }
 0x14e   : > { %v1343_v47 = vpop.f32.mrf.mxu0 }
 0x14f   : > { %v612_v48 = vpack.c.bf16 %v1342_v46, %v1339_v45 }
 0x150   : > { %v1344_v49 = vpop.f32.mrf.mxu0 }
 0x151   : > { %1433 = vmatprep.mubr.bf16.mxu1 %v612_v48  ;;  %v1345_v52 = vadd.f32 %v1344_v49, %v1343_v47 }
 0x152   : > { %v1346_v50 = vpop.f32.mrf.mxu0 }
 0x154   : > { %v1347_v51 = vpop.f32.mrf.mxu0 }
 0x155   : > { %v1348_v53 = vadd.f32 %v1347_v51, %v1346_v50 }
 0x156   : > { %v1349_v54 = vpop.f32.mrf.mxu0 }
 0x157   : > { %v613_v55 = vpack.c.bf16 %v1348_v53, %v1345_v52 }
 0x158   : > { %v1350_v57 = vpop.f32.mrf.mxu0 }
 0x159   : > { %1434 = vmatmul.mubr.bf16.vlgmr.msra.gmra.mxu1 %v613_v55  ;;  %v1351_v61 = vadd.f32 %v1350_v57, %v1349_v54 }
 0x15a   : > { %v1352_v58 = vpop.f32.mrf.mxu0  ;;  %1450 = vmatpush3.bf16.msra.mxu1 %v1612_v40 }
 0x15b   : > { %1451 = vmatprep.subr.bf16.mxu1 %v1613_v56 }
 0x15c   : > { %v1353_v60 = vpop.f32.mrf.mxu0 }
 0x15d   : > { %v1354_v62 = vadd.f32 %v1353_v60, %v1352_v58 }
 0x15e   : > { %v1355_v63 = vpop.f32.mrf.mxu0  ;;  %1452 = vmatpush3.bf16.msra.mxu1 %v1613_v56 }
 0x15f   : > { %v614_v0 = vpack.c.bf16 %v1354_v62, %v1351_v61  ;;  %1453 = vmatprep.subr.bf16.mxu1 %v1614_v59 }
 0x160   : > { %v1356_v2 = vpop.f32.mrf.mxu0 }
 0x161   : > { %1437 = vmatprep.mubr.bf16.mxu1 %v614_v0  ;;  %v1357_v6 = vadd.f32 %v1356_v2, %v1355_v63 }
 0x162   : > { %v1358_v3 = vpop.f32.mrf.mxu0  ;;  %1454 = vmatpush3.bf16.msra.mxu1 %v1614_v59 }
 0x163   : > { %1455 = vmatprep.subr.bf16.mxu1 %v1615_v1 }
 0x164   : > { %v1359_v5 = vpop.f32.mrf.mxu0 }
 0x165   : > { %v1360_v7 = vadd.f32 %v1359_v5, %v1358_v3 }
 0x166   : > { %v1361_v8 = vpop.f32.mrf.mxu0  ;;  %1456 = vmatpush3.bf16.msra.mxu1 %v1615_v1 }
 0x167   : > { %v615_v9 = vpack.c.bf16 %v1360_v7, %v1357_v6  ;;  %1457 = vmatprep.subr.bf16.mxu1 %v1616_v4 }
 0x168   : > { %v1362_v10 = vpop.f32.mrf.mxu0 }
 0x169   : > { %1438 = vmatmul.mubr.bf16.gmra.mxu1 %v615_v9  ;;  %v1363_v13 = vadd.f32 %v1362_v10, %v1361_v8 }
 0x16a   : > { %v1364_v11 = vpop.f32.mrf.mxu0  ;;  %1458 = vmatpush3.bf16.msra.mxu1 %v1616_v4 }
 0x16b   : > { %1459 = vmatprep.subr.bf16.mxu1 %v1617_v37 }
 0x16c   : > { %v1365_v12 = vpop.f32.mrf.mxu0 }
 0x16d   : > { %v1366_v14 = vadd.f32 %v1365_v12, %v1364_v11 }
 0x16e   : > { %v1367_v15 = vpop.f32.mrf.mxu0  ;;  %1460 = vmatpush3.bf16.msra.mxu1 %v1617_v37 }
 0x16f   : > { %v616_v16 = vpack.c.bf16 %v1366_v14, %v1363_v13  ;;  %1461 = vmatprep.subr.bf16.mxu1 %v1618_v38 }
 0x170   : > { %v1368_v17 = vpop.f32.mrf.mxu0 }
 0x171   : > { %1441 = vmatprep.mubr.bf16.mxu1 %v616_v16  ;;  %v1369_v20 = vadd.f32 %v1368_v17, %v1367_v15 }
 0x172   : > { %v1370_v18 = vpop.f32.mrf.mxu0  ;;  %1462 = vmatpush3.bf16.msra.mxu1 %v1618_v38 }
 0x173   : > { %1463 = vmatprep.subr.bf16.mxu1 %v1619_v39 }
 0x174   : > { %v1371_v19 = vpop.f32.mrf.mxu0 }
 0x175   : > { %v1372_v21 = vadd.f32 %v1371_v19, %v1370_v18 }
 0x176   : > { %v1373_v22 = vpop.f32.mrf.mxu0  ;;  %1464 = vmatpush3.bf16.msra.mxu1 %v1619_v39 }
 0x177   : > { %v617_v23 = vpack.c.bf16 %v1372_v21, %v1369_v20 }
 0x178   : > { %v1374_v24 = vpop.f32.mrf.mxu0 }
 0x179   : > { %1442 = vmatmul.mubr.bf16.gmra.mxu1 %v617_v23  ;;  %v1375_v27 = vadd.f32 %v1374_v24, %v1373_v22 }
 0x17a   : > { %v1376_v25 = vpop.f32.mrf.mxu0 }
 0x17c   : > { %v1377_v26 = vpop.f32.mrf.mxu0 }
 0x17d   : > { %v1378_v28 = vadd.f32 %v1377_v26, %v1376_v25 }
 0x17e   : > { %v1379_v29 = vpop.f32.mrf.mxu0 }
 0x17f   : > { %v618_v30 = vpack.c.bf16 %v1378_v28, %v1375_v27 }
 0x180   : > { %v1380_v31 = vpop.f32.mrf.mxu0 }
 0x181   : > { %1445 = vmatprep.mubr.bf16.mxu1 %v618_v30  ;;  %v1381_v34 = vadd.f32 %v1380_v31, %v1379_v29 }
 0x182   : > { %v1382_v32 = vpop.f32.mrf.mxu0 }
 0x184   : > { %v1383_v33 = vpop.f32.mrf.mxu0 }
 0x185   : > { %v1384_v35 = vadd.f32 %v1383_v33, %v1382_v32 }
 0x187   : > { %v619_v36 = vpack.c.bf16 %v1384_v35, %v1381_v34 }
 0x189   : > { %1446 = vmatmul.mubr.bf16.gmra.mxu1 %v619_v36 }
 0x219   : > { %v1435_v40 = vpop.f32.mrf.mxu1 }
 0x21a   : > { %v734_v46 = vadd.f32 %v1435_v40, %v1217_v42 }
 0x21b   : > { %v725_v41 = vpop.f32.mrf.mxu1 }
 0x21c   : > { %v726_v44 = vadd.f32 %v1217_v42, %v725_v41  ;;  %v790_v52 = vmax.f32 %v734_v46, 0.0 }
 0x21d   : > { %v1436_v43 = vpop.f32.mrf.mxu1 }
 0x21e   : > { %v737_v45 = vadd.f32 %v1436_v43, %v1217_v42  ;;  %v788_v50 = vmax.f32 %v726_v44, 0.0 }
 0x21f   : > { %v728_v47 = vpop.f32.mrf.mxu1 }
 0x220   : > { %v729_v48 = vadd.f32 %v1217_v42, %v728_v47  ;;  %v791_v49 = vmax.f32 %v737_v45, 0.0 }
 0x222   : > { %v789_v51 = vmax.f32 %v729_v48, 0.0  ;;  %v805_v54 = vpack.c.bf16 %v791_v49, %v790_v52 }
 0x224   : > { %v804_v53 = vpack.c.bf16 %v789_v51, %v788_v50 }
 0x226   : > { %1465 = vmatprep.mubr.bf16.mxu1 %v804_v53 }
 0x227   : > { %1466 = vmatmul.mubr.bf16.vlgmr.msra.gmra.mxu1 %v805_v54 }
 0x229   : > { %v1439_v55 = vpop.f32.mrf.mxu1 }
 0x22a   : > { %v750_v60 = vadd.f32 %v1439_v55, %v1217_v42 }
 0x22b   : > { %v741_v56 = vpop.f32.mrf.mxu1 }
 0x22c   : > { %v742_v58 = vadd.f32 %v1217_v42, %v741_v56  ;;  %v794_v2 = vmax.f32 %v750_v60, 0.0 }
 0x22d   : > { %v1440_v57 = vpop.f32.mrf.mxu1 }
 0x22e   : > { %v753_v59 = vadd.f32 %v1440_v57, %v1217_v42  ;;  %v792_v0 = vmax.f32 %v742_v58, 0.0 }
 0x22f   : > { %v744_v61 = vpop.f32.mrf.mxu1 }
 0x230   : > { %v745_v62 = vadd.f32 %v1217_v42, %v744_v61  ;;  %v795_v63 = vmax.f32 %v753_v59, 0.0 }
 0x232   : > { %v793_v1 = vmax.f32 %v745_v62, 0.0  ;;  %v807_v4 = vpack.c.bf16 %v795_v63, %v794_v2 }
 0x234   : > { %v806_v3 = vpack.c.bf16 %v793_v1, %v792_v0 }
 0x236   : > { %1469 = vmatprep.mubr.bf16.mxu1 %v806_v3 }
 0x237   : > { %1470 = vmatmul.mubr.bf16.gmra.mxu1 %v807_v4 }
 0x239   : > { %v1443_v5 = vpop.f32.mrf.mxu1 }
 0x23a   : > { %v766_v10 = vadd.f32 %v1443_v5, %v1217_v42 }
 0x23b   : > { %v757_v6 = vpop.f32.mrf.mxu1 }
 0x23c   : > { %v758_v8 = vadd.f32 %v1217_v42, %v757_v6  ;;  %v798_v16 = vmax.f32 %v766_v10, 0.0 }
 0x23d   : > { %v1444_v7 = vpop.f32.mrf.mxu1 }
 0x23e   : > { %v769_v9 = vadd.f32 %v1444_v7, %v1217_v42  ;;  %v796_v14 = vmax.f32 %v758_v8, 0.0 }
 0x23f   : > { %v760_v11 = vpop.f32.mrf.mxu1 }
 0x240   : > { %v761_v12 = vadd.f32 %v1217_v42, %v760_v11  ;;  %v799_v13 = vmax.f32 %v769_v9, 0.0 }
 0x242   : > { %v797_v15 = vmax.f32 %v761_v12, 0.0  ;;  %v809_v18 = vpack.c.bf16 %v799_v13, %v798_v16 }
 0x244   : > { %v808_v17 = vpack.c.bf16 %v797_v15, %v796_v14 }
 0x246   : > { %1473 = vmatprep.mubr.bf16.mxu1 %v808_v17 }
 0x247   : > { %1474 = vmatmul.mubr.bf16.gmra.mxu1 %v809_v18 }
 0x249   : > { %v1447_v19 = vpop.f32.mrf.mxu1 }
 0x24a   : > { %v782_v24 = vadd.f32 %v1447_v19, %v1217_v42 }
 0x24b   : > { %v773_v20 = vpop.f32.mrf.mxu1 }
 0x24c   : > { %v774_v22 = vadd.f32 %v1217_v42, %v773_v20  ;;  %v802_v30 = vmax.f32 %v782_v24, 0.0 }
 0x24d   : > { %v1448_v21 = vpop.f32.mrf.mxu1 }
 0x24e   : > { %v785_v23 = vadd.f32 %v1448_v21, %v1217_v42  ;;  %v800_v28 = vmax.f32 %v774_v22, 0.0 }
 0x24f   : > { %v776_v25 = vpop.f32.mrf.mxu1 }
 0x250   : > { %v777_v26 = vadd.f32 %v1217_v42, %v776_v25  ;;  %v803_v27 = vmax.f32 %v785_v23, 0.0 }
 0x252   : > { %v801_v29 = vmax.f32 %v777_v26, 0.0  ;;  %v811_v32 = vpack.c.bf16 %v803_v27, %v802_v30 }
 0x254   : > { %v810_v31 = vpack.c.bf16 %v801_v29, %v800_v28 }
 0x256   : > { %1477 = vmatprep.mubr.bf16.mxu1 %v810_v31 }
 0x257   : > { %1478 = vmatmul.mubr.bf16.gmra.mxu1 %v811_v32 }
 0x2e7   : > { %v1467_v33 = vpop.f32.mrf.mxu1 }
 0x2e9   : > { %v910_v34 = vpop.f32.mrf.mxu1 }
 0x2eb   : > { %v1468_v35 = vpop.f32.mrf.mxu1 }
 0x2ec   : > { %v1282_v36 = vpack.c.bf16 %v1468_v35, %v1467_v33 }
 0x2ed   : > { %v913_v37 = vpop.f32.mrf.mxu1 }
 0x2ee   : > { %1314 = vst [vmem:[%s2014_s15 + $0x8] sm:$0xff] %v1282_v36   ;;  %v1277_v38 = vpack.c.bf16 %v913_v37, %v910_v34 }
 0x2f0   : > { %1278 = vst [vmem:[%s2014_s15] sm:$0xff] %v1277_v38  }
 0x2f7   : > { %v1471_v39 = vpop.f32.mrf.mxu1 }
 0x2f9   : > { %v926_v40 = vpop.f32.mrf.mxu1 }
 0x2fb   : > { %v1472_v41 = vpop.f32.mrf.mxu1 }
 0x2fc   : > { %v1292_v42 = vpack.c.bf16 %v1472_v41, %v1471_v39 }
 0x2fd   : > { %v929_v43 = vpop.f32.mrf.mxu1 }
 0x2fe   : > { %1316 = vst [vmem:[%s2014_s15 + $0x18] sm:$0xff] %v1292_v42   ;;  %v1287_v44 = vpack.c.bf16 %v929_v43, %v926_v40 }
 0x300   : > { %1315 = vst [vmem:[%s2014_s15 + $0x10] sm:$0xff] %v1287_v44  }
 0x307   : > { %v1475_v45 = vpop.f32.mrf.mxu1 }
 0x309   : > { %v942_v46 = vpop.f32.mrf.mxu1 }
 0x30b   : > { %v1476_v47 = vpop.f32.mrf.mxu1 }
 0x30c   : > { %v1302_v48 = vpack.c.bf16 %v1476_v47, %v1475_v45 }
 0x30d   : > { %v945_v49 = vpop.f32.mrf.mxu1 }
 0x30e   : > { %1318 = vst [vmem:[%s2014_s15 + $0x28] sm:$0xff] %v1302_v48   ;;  %v1297_v50 = vpack.c.bf16 %v945_v49, %v942_v46 }
 0x310   : > { %1317 = vst [vmem:[%s2014_s15 + $0x20] sm:$0xff] %v1297_v50  }
 0x317   : > { %v1479_v51 = vpop.f32.mrf.mxu1 }
 0x319   : > { %v958_v52 = vpop.f32.mrf.mxu1 }
 0x31b   : > { %v1480_v53 = vpop.f32.mrf.mxu1 }
 0x31c   : > { %v1312_v54 = vpack.c.bf16 %v1480_v53, %v1479_v51 }
 0x31d   : > { %v961_v55 = vpop.f32.mrf.mxu1 }
 0x31e   : > { %1320 = vst [vmem:[%s2014_s15 + $0x38] sm:$0xff] %v1312_v54   ;;  %v1307_v56 = vpack.c.bf16 %v961_v55, %v958_v52 }
 0x320   : > { %1319 = vst [vmem:[%s2014_s15 + $0x30] sm:$0xff] %v1307_v56  }
 0x321   : > { %1739 = shalt.err (!%p1736_p9)
}
 0x322   : > { %s1740_s12 = scalar_lea.hbm %s2029_s11, 1024  ;;  %s1744_s26 = scalar_lea.hbm %s2079_s5, 2048 }
 0x323   : > { %p1741_p1 = scmp.ne.s32.totalorder %s2029_s11, %s1740_s12  ;;  %p1745_p11 = scmp.lt.s32.totalorder %s2029_s11, %s2079_s5 }
 0x324   : > { %p1746_p13 = scmp.lt.s32.totalorder %s1744_s26, %s1740_s12 }
 0x325   : > { %p1742_p8 = pnand %p1741_p1, %p2097_p6 }
 0x326   : > { %p1747_p2 = por %p1746_p13, %p1745_p11 }
 0x327   : > { %p1743_p10 = pneg %p1742_p8 }
 0x329   : > { %p1748_p4 = pnand %p1747_p2, %p1743_p10 }
 0x32b   : > { %1751 = shalt.err (!%p1748_p4)
}
 0x32c   : > { %s1809_s17 = smov 64   ;;  %s1810_s9 = smov 4  }
 0x32d   : > { %1495 = dma.vmem_to_hbm [thread:$0]  (%p2097_p6), %s2024_s16, 1024, %s2029_s11, %s1054_s14, %s1809_s17, %s1809_s17, %s1810_s9  }
 0x32e PF: > { %s1082_s10 = sand.u32 1, %s1786_s18   ;;  %p2098_p12 = scmp.ne.s32.totalorder %s2085_s25, 0 }
 0x32f   : > { %p2099_p0 = scmp.ge.s32.totalorder %s1798_s21, 2  ;;  %s1083_s23 = scalar_lea.sflag [#allocation4], %s1082_s10 }
 0x331   : > { %p1512_p5 = pnand %p2099_p0, %p2098_p12 }
 0x333   : > { %p1513_p3 = pneg %p1512_p5 }
 0x335   : > { %1781 = dma.done.wait (%p1513_p3), %s1083_s23, 1024  }
 0x336   : > { %1783 = vsyncadd (%p1513_p3), %s1083_s23, 4294966272  ;;  %p20_p7 = scmp.ge.s32.totalorder %s1921_s28, 4   ;;  %s2100_s18 = smov %s1790_s19 }
 0x337   : > { %s2101_s19 = smov %s1794_s20  ;;  %s2102_s20 = smov %s1931_s6 }
 0x338   : > { %s2103_s21 = smov %s1921_s28  ;;  %22 = sbr.rel (!%p20_p7) target bundleno = 7 (0x7), region = 97 }
 0x33d   :  { %1088 = vsyncpa [#allocation3], 1 }
 0x33e   :  { %1090 = vsyncpa [#allocation3 + $0x1], 1 }
 0x33f   :  { %1091 = vsyncpa [#allocation6], 1 }
 0x340   :  { %1092 = vsyncpa [#allocation9], 1 }
 0x341   :  { %1093 = vsyncpa [#allocation4], 1 }
 0x342   :  { %1095 = vsyncpa [#allocation4 + $0x1], 1 }

</bundles_post_ra>
